<compile_context>
chip_gen: v7x
topology: tpu7x:2x2x1
jax: 0.10.0
libtpu: 0.0.40
codegen_flags: <defaults>
</compile_context>

<pallas_src>
import jax
import jax.numpy as jnp
from jax.experimental import pallas as pl
from jax.experimental.pallas import tpu as pltpu

TOKEN_LENGTH = 32  # vocab_size of the positional embedding table


def _binary_embedding_kernel(bits_ref, expand_ref, tflat_ref, emb_ref):
    # bits_ref   : (1, S_TILE, T)    narrow input dtype (int8 here), values {0,1}
    # expand_ref : (T, T*H)          bf16 0/1 block-expansion matrix
    # tflat_ref  : (1, T*H)          f32 flattened embedding table
    # emb_ref    : (1, S_TILE, T*H)  f32 lane-dense embeddings output
    amp = bits_ref[0].astype(jnp.float32) * 2.0 - 1.0        # (S_TILE, T), {-1,+1}
    # Expand amplitude to (S_TILE, T*H): amp_exp[s, t*H + h] = amp[s, t].
    # bf16 +-1 times bf16 0/1 is exactly representable -> exact single-pass MXU.
    amp_exp = jnp.dot(amp.astype(jnp.bfloat16), expand_ref[...],
                      preferred_element_type=jnp.float32)     # (S_TILE, T*H)
    emb_ref[0] = amp_exp * tflat_ref[...]                     # broadcast (1, T*H)


def _pick_s_tile(S, T, H, bits_itemsize, B, target_bytes=8 * 1024 * 1024):
    """Pick an S tile of ~target_bytes of f32 emb output, aligned to the bits
    dtype's packed sublane tiling (f32 -> 8, bf16 -> 16, int8 -> 32)."""
    mult = 8 * max(1, 4 // int(bits_itemsize))
    bytes_per_row = T * H * 4
    rows = max(1, target_bytes // bytes_per_row)
    if rows >= S:
        s_tile = S                                   # full-S block per item
    else:
        s_tile = min(S, max(mult, (rows // mult) * mult))
    # v7x has 2 TensorCores: make sure the (B, n_s) grid has >= 2 steps.
    if B == 1 and s_tile >= S and S >= 2 * mult:
        half = (-(-((S + 1) // 2) // mult)) * mult   # ceil(S/2) rounded up to mult
        if half < S:
            s_tile = half
    return s_tile


def binary_embedding_layer(bits_flat, embed_table):
    """
    Args:
      bits_flat:   (B, S*TOKEN_LENGTH) binary sequences (0/1); kept in their
                   input dtype (int8/uint8/bf16/f32) -- cast happens in-kernel.
      embed_table: (TOKEN_LENGTH, H)   float32 embedding weights.
    Returns:
      embeddings:    (B, S, TOKEN_LENGTH, H)  float32
      probabilities: (B, S, TOKEN_LENGTH, 1)  float32
    """
    B = bits_flat.shape[0]
    T, H = embed_table.shape
    assert T == TOKEN_LENGTH
    assert bits_flat.shape[1] % T == 0
    S = bits_flat.shape[1] // T
    TH = T * H

    if bits_flat.dtype == jnp.bool_:
        bits_flat = bits_flat.astype(jnp.int8)
    bits = bits_flat.reshape(B, S, T)               # no upcast: kernel casts in VMEM
    table = embed_table.astype(jnp.float32)

    # Tiny host-side constants: 0/1 expansion matrix (bf16, exact) + flat table.
    expand = jnp.repeat(jnp.eye(T, dtype=jnp.bfloat16), H, axis=1)   # (T, T*H)
    tflat = table.reshape(1, TH)                                     # (1, T*H)

    bits_itemsize = bits.dtype.itemsize
    s_tile = _pick_s_tile(S, T, H, bits_itemsize, B)
    n_s = pl.cdiv(S, s_tile)

    # Explicit VMEM budget: double-buffered emb/bits tiles plus the constants
    # (the default pipeline double-buffers those too; negligible at H=32 -- for
    # very large H consider pipeline_mode=pl.Buffered(1) on the constant specs).
    emb_tile_bytes = s_tile * TH * 4
    bits_tile_bytes = s_tile * T * bits_itemsize
    const_bytes = expand.size * 2 + TH * 4
    vmem_needed = 2 * (emb_tile_bytes + bits_tile_bytes + const_bytes)
    vmem_limit = int(min(max(vmem_needed + (4 << 20), 16 << 20), 48 << 20))

    cost = pl.CostEstimate(
        flops=2 * B * S * T * TH + B * S * TH,
        transcendentals=0,
        bytes_accessed=(B * S * T * bits_itemsize + expand.size * 2 + TH * 4
                        + B * S * TH * 4),
    )

    grid_spec = pltpu.PrefetchScalarGridSpec(
        num_scalar_prefetch=0,
        grid=(B, n_s),
        in_specs=[
            pl.BlockSpec((1, s_tile, T), lambda b, s: (b, s, 0)),
            pl.BlockSpec((T, TH), lambda b, s: (0, 0)),
            pl.BlockSpec((1, TH), lambda b, s: (0, 0)),
        ],
        out_specs=pl.BlockSpec((1, s_tile, TH), lambda b, s: (b, s, 0)),
    )

    emb_flat = pl.pallas_call(
        _binary_embedding_kernel,
        out_shape=jax.ShapeDtypeStruct((B, S, TH), jnp.float32),
        grid_spec=grid_spec,
        compiler_params=pltpu.CompilerParams(
            dimension_semantics=("parallel", "parallel"),
            vmem_limit_bytes=vmem_limit,
        ),
        cost_estimate=cost,
    )(bits, expand, tflat)

    emb = emb_flat.reshape(B, S, T, H)   # free contiguous split of the last dim

    # logit_prime(s,t) = sum_h amp(s,t)*E(t,h) = amp(s,t) * rowsum(t).
    # Exact vs. the reference sum, and only B*S*T*4 bytes (~1/H of emb traffic),
    # so it is cheapest as a plain XLA op; this keeps the kernel with a single
    # lane-dense output (no masked last-dim-32 partial stores).
    rowsum = jnp.sum(table, axis=1)                              # (T,)
    amp = bits.astype(jnp.float32) * 2.0 - 1.0                   # (B, S, T)
    prob = (amp * rowsum).reshape(B, S, T, 1)
    # NOTE: a bf16 emb output would halve the dominant HBM writeback but changes
    # the output contract, so it is not taken here.
    return emb, prob


def _reference(bits_flat, embed_table):
    B = bits_flat.shape[0]
    T, H = embed_table.shape
    S = bits_flat.shape[1] // T
    bits = bits_flat.reshape(B, S, T).astype(jnp.float32)
    amplitude = bits * 2.0 - 1.0                         # (B, S, T)
    base = embed_table[None, None, :, :]                 # (1, 1, T, H)
    emb = base * amplitude[..., None]                    # (B, S, T, H)
    prob = jnp.sum(emb, axis=-1, keepdims=True)          # (B, S, T, 1)
    return emb, prob


if __name__ == "__main__":
    # Small shapes consistent with the module: batch=2, seq_len=8, hidden=32.
    batch = 2
    seq_len = 8
    hidden_size = 32

    key = jax.random.PRNGKey(0)
    k_bits, k_table = jax.random.split(key)

    # Binary (0/1) input sequences, flat per item, kept in a narrow dtype (int8);
    # the kernel does the f32 cast in VMEM.
    # TODO(synk): host-side text -> bit preprocessing (preprocess_text) is string
    # handling with no Pallas equivalent; the kernel consumes the bit tensors.
    bits_flat = jax.random.bernoulli(
        k_bits, p=0.5, shape=(batch, seq_len * TOKEN_LENGTH)
    ).astype(jnp.int8)

    # nn.Embedding default init ~ N(0, 1); deterministic synthetic weights.
    embed_table = jax.random.normal(
        k_table, (TOKEN_LENGTH, hidden_size), dtype=jnp.float32
    )

    emb, prob = binary_embedding_layer(bits_flat, embed_table)
    jax.block_until_ready((emb, prob))

    emb_ref, prob_ref = _reference(bits_flat, embed_table)
    assert emb.shape == (batch, seq_len, TOKEN_LENGTH, hidden_size)
    assert prob.shape == (batch, seq_len, TOKEN_LENGTH, 1)
    assert jnp.allclose(emb, emb_ref, atol=1e-6, rtol=1e-6)
    assert jnp.allclose(prob, prob_ref, atol=1e-5, rtol=1e-5)

    print("KERNEL_OK")
</pallas_src>

<mosaic_0001>
module attributes {stable_mosaic.version = 11 : i64} {
  func.func @_binary_embedding_kernel(%arg0: i32, %arg1: i32, %arg2: memref<1x8x32xi8, #tpu.memory_space<vmem>>, %arg3: memref<32x1024xbf16, #tpu.memory_space<vmem>>, %arg4: memref<1x1024xf32, #tpu.memory_space<vmem>>, %arg5: memref<1x8x1024xf32, #tpu.memory_space<vmem>>) attributes {dimension_semantics = [#tpu.dimension_semantics<parallel>, #tpu.dimension_semantics<parallel>], iteration_bounds = array<i64: 2, 1>, scalar_prefetch = 0 : i64, scratch_operands = 0 : i64, tpu.core_type = #tpu.core_type<tc>, window_params = [{transform_indices = @transform_0, window_bounds = array<i64: 1, 8, 32>}, {pipeline_mode = #tpu.pipeline_mode<synchronous>, transform_indices = @transform_1, window_bounds = array<i64: 32, 1024>}, {pipeline_mode = #tpu.pipeline_mode<synchronous>, transform_indices = @transform_2, window_bounds = array<i64: 1, 1024>}, {transform_indices = @transform_3, window_bounds = array<i64: 1, 8, 1024>}]} {
    %c0 = arith.constant 0 : index
    %c0_0 = arith.constant 0 : index
    %c0_1 = arith.constant 0 : index
    %0 = vector.load %arg2[%c0, %c0_0, %c0_1] : memref<1x8x32xi8, #tpu.memory_space<vmem>>, vector<1x8x32xi8>
    %1 = vector.shape_cast %0 : vector<1x8x32xi8> to vector<8x32xi8>
    %2 = arith.sitofp %1 : vector<8x32xi8> to vector<8x32xf32>
    %cst = arith.constant 2.000000e+00 : f32
    %3 = vector.broadcast %cst : f32 to vector<8x32xf32>
    %4 = arith.mulf %2, %3 : vector<8x32xf32>
    %cst_2 = arith.constant 1.000000e+00 : f32
    %5 = vector.broadcast %cst_2 : f32 to vector<8x32xf32>
    %6 = arith.subf %4, %5 : vector<8x32xf32>
    %7 = arith.truncf %6 : vector<8x32xf32> to vector<8x32xbf16>
    %c0_3 = arith.constant 0 : index
    %c0_4 = arith.constant 0 : index
    %8 = vector.load %arg3[%c0_3, %c0_4] : memref<32x1024xbf16, #tpu.memory_space<vmem>>, vector<32x1024xbf16>
    %cst_5 = arith.constant dense<0.000000e+00> : vector<8x1024xf32>
    %9 = tpu.matmul %7, %8, %cst_5 {dimension_numbers = #tpu.dot_dimension_numbers<[1], [0], [0], [1], [0, 0, 1, 1], [], []>} : vector<8x32xbf16>, vector<32x1024xbf16>, vector<8x1024xf32> -> vector<8x1024xf32>
    %c0_6 = arith.constant 0 : index
    %c0_7 = arith.constant 0 : index
    %10 = vector.load %arg4[%c0_6, %c0_7] : memref<1x1024xf32, #tpu.memory_space<vmem>>, vector<1x1024xf32>
    %11 = vector.broadcast %10 : vector<1x1024xf32> to vector<8x1024xf32>
    %12 = arith.mulf %9, %11 : vector<8x1024xf32>
    %c0_8 = arith.constant 0 : index
    %c0_9 = arith.constant 0 : index
    %c0_10 = arith.constant 0 : index
    %13 = vector.load %arg5[%c0_8, %c0_9, %c0_10] : memref<1x8x1024xf32, #tpu.memory_space<vmem>>, vector<1x8x1024xf32>
    %14 = vector.shape_cast %13 : vector<1x8x1024xf32> to vector<8x1024xf32>
    %15 = vector.shape_cast %12 : vector<8x1024xf32> to vector<1x8x1024xf32>
    tpu.vector_store %arg5[%c0_8, %c0_9, %c0_10], %15 {strides = array<i32>} : memref<1x8x1024xf32, #tpu.memory_space<vmem>>, vector<1x8x1024xf32>,
    return
  }
  func.func @transform_0(%arg0: i32, %arg1: i32) -> (i32, i32, i32) {
    %c0_i32 = arith.constant 0 : i32
    %c0_i32_0 = arith.constant 0 : i32
    return %arg0, %arg1, %c0_i32 : i32, i32, i32
  }
  func.func @transform_1(%arg0: i32, %arg1: i32) -> (i32, i32) {
    %c0_i32 = arith.constant 0 : i32
    %c0_i32_0 = arith.constant 0 : i32
    %c0_i32_1 = arith.constant 0 : i32
    return %c0_i32, %c0_i32_0 : i32, i32
  }
  func.func @transform_2(%arg0: i32, %arg1: i32) -> (i32, i32) {
    %c0_i32 = arith.constant 0 : i32
    %c0_i32_0 = arith.constant 0 : i32
    %c0_i32_1 = arith.constant 0 : i32
    return %c0_i32, %c0_i32_0 : i32, i32
  }
  func.func @transform_3(%arg0: i32, %arg1: i32) -> (i32, i32, i32) {
    %c0_i32 = arith.constant 0 : i32
    %c0_i32_0 = arith.constant 0 : i32
    return %arg0, %arg1, %c0_i32 : i32, i32, i32
  }
}

</mosaic_0001>

<bundles_post_ra>
// kernel: tpu_custom_call.1
= control target key start
LH: loop header
LB: loop body
LE: loop exit
PB: predicated region body
PF: predicated region fallthrough
CT: control target
= control target key end

     0   :  { %8 = vsyncpa [#allocation3], 0  ;;  %s1259_s0 = inlined_call_operand.hbm [shape: s8[2,8,32], index: 0, kind: input, shape index: {}]   ;;  %s1260_s1 = inlined_call_operand.hbm [shape: bf16[32,1024], index: 1, kind: input, shape index: {}]   ;;  %s1261_s2 = inlined_call_operand.hbm [shape: f32[1,1024], index: 2, kind: input, shape index: {}]   ;;  %s1262_s3 = inlined_call_operand.hbm [shape: f32[2,8,1024], index: 3, kind: output, shape index: {}]  }
   0x1   :  { %10 = vsyncpa [#allocation3 + $0x1], 0 }
   0x2   :  { %11 = vsyncpa [#allocation6], 0 }
   0x3   :  { %12 = vsyncpa [#allocation4], 0 }
   0x4   :  { %14 = vsyncpa [#allocation4 + $0x1], 0  ;;  %s1004_s12 = smov 0   ;;  %s1006_s13 = smov 0  }
   0x5   :  { %s1008_s14 = smov 0   ;;  %s1010_s15 = smov 0  }
   0x6   :  { %s1012_s16 = smov 0   ;;  %s1014_s17 = smov 0  }
   0x7 LB: > { %s677_s18 = sadd.s32 4294967295, %s975_s17   ;;  %s678_s19 = sadd.s32 4294967294, %s975_s17   ;;  %s975_s17 = sphi %s1014_s17, %s20_s17   ;;  %s971_s16 = sphi %s1012_s16, %s1284_s16   ;;  %s967_s15 = sphi %s1010_s15, %s1283_s15   ;;  %s963_s14 = sphi %s1008_s14, %s1282_s14   ;;  %s959_s13 = sphi %s1006_s13, %s1281_s13   ;;  %s955_s12 = sphi %s1004_s12, %s1280_s12  }
   0x8   : > { %p54_p0 = scmp.ne.s32.totalorder %s959_s13, %s955_s12  ;;  %p1038_p1 = scmp.eq.s32.totalorder %s677_s18, 0 }
   0x9   : > { %p1042_p2 = scmp.eq.s32.totalorder %s677_s18, 1  ;;  %p128_p3 = scmp.eq.s32.totalorder %s678_s19, 1 }
   0xa   : > { %s1267_s20 = scalar_select %p1038_p1, 1, 0 }
   0xb   : > { %p1048_p4 = por %p1038_p1, %p54_p0  ;;  %p679_p5 = scmp.ge.s32.totalorder %s975_s17, 1 }
   0xc   : > { %p1053_p6 = por %p128_p3, %p54_p0  ;;  %p135_p7 = scmp.lt.s32.totalorder %s975_s17, 3 }
   0xd   : > { %s1269_s22 = scalar_select %p1048_p4, 1, 0 }
   0xe   : > { %s1270_s23 = scalar_select %p1053_p6, 1, 0 }
   0xf   : > { %p1058_p8 = pnand %p679_p5, %p135_p7  ;;  %s977_s25 = smov [#allocation5]  }
  0x10   : > { %s147_s26 = sshll.u32 %s977_s25, 4  ;;  %s978_s28 = smov [#allocation7]   ;;  %s1062_s26 = int_to_ptr.vmem [resolvable:$true] %s147_s26 }
  0x11   : > { %p729_p9 = pneg %p1058_p8  ;;  %s161_s29 = sshll.u32 %s978_s28, 4  ;;  %s1073_s29 = int_to_ptr.vmem [resolvable:$true] %s161_s29 }
  0x12   : > { %s803_s5 = scalar_lea.hbm %s1260_s1, 2048 }
  0x13   : > { %p1069_p11 = pnand %p729_p9, %p1038_p1  ;;  %p804_p12 = scmp.ne.s32.totalorder %s1260_s1, %s803_s5 }
  0x14   : > { %p810_p5 = scmp.lt.u32.totalorder %s803_s5, %s1260_s1 }
  0x15   : > { %p805_p13 = pneg %p1069_p11 }
  0x17   : > { %p806_p0 = pnand %p805_p13, %p804_p12 }
  0x19   : > { %p807_p3 = pneg %p806_p0 }
  0x1b   : > { %p812_p7 = pnand %p810_p5, %p807_p3 }
  0x1d   : > { %815 = shalt.err (!%p812_p7)
}
  0x1e   : > { %s816_s10 = scalar_lea.vmem %s1062_s26, 2048  ;;  %p824_p1 = scmp.lt.s32.totalorder %s1062_s26, %s1062_s26 }
  0x1f   : > { %p817_p9 = scmp.ne.s32.totalorder %s1062_s26, %s816_s10  ;;  %p825_p12 = scmp.lt.s32.totalorder %s816_s10, %s816_s10 }
  0x21   : > { %p819_p10 = pnand %p817_p9, %p805_p13  ;;  %p826_p0 = por %p825_p12, %p824_p1 }
  0x23   : > { %p820_p6 = pneg %p819_p10 }
  0x25   : > { %p827_p4 = pnand %p826_p0, %p820_p6 }
  0x27   : > { %830 = shalt.err (!%p827_p4)
}
  0x28   : > { %s979_s11 = smov 512   ;;  %s980_s18 = smov 32  }
  0x29   : > { %732 = dma.hbm_to_vmem [thread:$0]  (!%p1069_p11), %s1260_s1, 2048, %s1062_s26, [#allocation6], %s979_s11, %s979_s11, %s980_s18  }
  0x2a   : > { %s831_s4 = scalar_lea.hbm %s1261_s2, 128 }
  0x2b   : > { %p832_p1 = scmp.ne.s32.totalorder %s1261_s2, %s831_s4  ;;  %p838_p10 = scmp.lt.u32.totalorder %s831_s4, %s1261_s2 }
  0x2d   : > { %p834_p4 = pnand %p832_p1, %p805_p13 }
  0x2f   : > { %p835_p6 = pneg %p834_p4 }
  0x31   : > { %p840_p3 = pnand %p838_p10, %p835_p6 }
  0x33   : > { %843 = shalt.err (!%p840_p3)
}
  0x34   : > { %s844_s26 = scalar_lea.vmem %s1073_s29, 128  ;;  %p852_p12 = scmp.lt.s32.totalorder %s1073_s29, %s1073_s29 }
  0x35   : > { %p845_p5 = scmp.ne.s32.totalorder %s1073_s29, %s844_s26  ;;  %p853_p0 = scmp.lt.s32.totalorder %s844_s26, %s844_s26 }
  0x37   : > { %p847_p7 = pnand %p845_p5, %p805_p13  ;;  %p854_p1 = por %p853_p0, %p852_p12 }
  0x39   : > { %p848_p9 = pneg %p847_p7 }
  0x3b   : > { %p855_p4 = pnand %p854_p1, %p848_p9 }
  0x3d   : > { %858 = shalt.err (!%p855_p4)
}
  0x3e   : > { %735 = dma.hbm_to_vmem [thread:$0]  (!%p1069_p11), %s1261_s2, 128, %s1073_s29, [#allocation6]  }
  0x3f   : > { %s32_s11 = sadd.s32 1, %s971_s16  ;;  %s41_s18 = sadd.s32 1, %s963_s14 }
  0x40   : > { %p34_p13 = scmp.ge.s32.totalorder %s32_s11, 2  ;;  %p48_p6 = scmp.ne.s32.totalorder %s963_s14, %s959_s13 }
  0x41   : > { %p49_p10 = scmp.eq.s32.totalorder %s975_s17, 0  ;;  %p746_p3 = scmp.lt.s32.totalorder %s975_s17, 2 }
  0x42   : > { %s1286_s11 = smov (%p34_p13, %s32_s11), 0  ;;  %p1137_p7 = por %p1042_p2, %p48_p6 }
  0x43   : > { %p50_p5 = por %p49_p10, %p48_p6  ;;  %s36_s19 = ssub.s32 %s971_s16, %s1286_s11 }
  0x44   : > { %s1273_s27 = scalar_select %p1137_p7, 1, 0 }
  0x45   : > { %s172_s25 = sand.u32 1, %s963_s14   ;;  %p39_p9 = scmp.eq.s32.totalorder %s36_s19, 0 }
  0x46   : > { %s683_s29 = sshll.u32 %s172_s25, 1  ;;  %s684_s28 = sshll.u32 %s971_s16, 5 }
  0x47   : > { %s1146_s30 = scalar_select %p39_p9, %s963_s14, %s41_s18  }
  0x48   : > { %s1151_s6 = scalar_lea.hbm %s1259_s0, %s684_s28  ;;  %s176_s21 = scalar_lea.vmem [#allocation2], %s683_s29 }
  0x49   : > { %s184_s7 = sshll.u32 %s176_s21, 4  ;;  %p1155_p2 = pnand %p746_p3, %p50_p5  ;;  %s1159_s7 = int_to_ptr.vmem [resolvable:$true] %s184_s7 }
  0x4a   : > { %s173_s26 = scalar_lea.sflag [#allocation3], %s172_s25  ;;  %s859_s9 = scalar_lea.hbm %s1151_s6, 32 }
  0x4b   : > { %p860_p11 = scmp.ne.s32.totalorder %s1151_s6, %s859_s9  ;;  %p861_p12 = pneg %p1155_p2 }
  0x4c   : > { %s864_s19 = scalar_lea.hbm %s1259_s0, 64  ;;  %p865_p4 = scmp.lt.u32.totalorder %s1151_s6, %s1259_s0 }
  0x4d   : > { %p862_p0 = pnand %p861_p12, %p860_p11  ;;  %p866_p13 = scmp.lt.u32.totalorder %s864_s19, %s859_s9 }
  0x4e   : > { %p868_p10 = scmp.lt.u32.totalorder %s859_s9, %s1151_s6 }
  0x4f   : > { %p863_p1 = pneg %p862_p0  ;;  %p867_p6 = por %p866_p13, %p865_p4 }
  0x51   : > { %p869_p3 = por %p868_p10, %p867_p6 }
  0x53   : > { %p870_p5 = pnand %p869_p3, %p863_p1 }
  0x55   : > { %873 = shalt.err (!%p870_p5)
}
  0x56   : > { %s874_s25 = scalar_lea.vmem %s1159_s7, 32  ;;  %s981_s4 = smov [#allocation2]  }
  0x57   : > { %p875_p9 = scmp.ne.s32.totalorder %s1159_s7, %s874_s25  ;;  %s879_s5 = sshll.u32 %s981_s4, 4  ;;  %s880_s5 = int_to_ptr.vmem [resolvable:$false] %s879_s5 }
  0x58   : > { %s881_s21 = scalar_lea.vmem %s880_s5, 64  ;;  %p882_p7 = scmp.lt.s32.totalorder %s1159_s7, %s880_s5 }
  0x59   : > { %p877_p11 = pnand %p875_p9, %p861_p12  ;;  %p883_p4 = scmp.lt.s32.totalorder %s881_s21, %s874_s25 }
  0x5b   : > { %p878_p0 = pneg %p877_p11  ;;  %p884_p13 = por %p883_p4, %p882_p7 }
  0x5d   : > { %p885_p6 = pnand %p884_p13, %p878_p0 }
  0x5f   : > { %888 = shalt.err (!%p885_p6)
}
  0x60   : > { %739 = dma.hbm_to_vmem [thread:$0]  (!%p1155_p2), %s1151_s6, 32, %s1159_s7, %s173_s26  }
  0x61   : > { %193 = sbr.rel (%p1058_p8) target bundleno = 358 (0x166), region = 32  ;;  %s1189_s9 = sand.u32 (!%p1058_p8), 1, %s959_s13  }
  0x62   : > { %s686_s10 = sshll.u32 (!%p1058_p8), %s1189_s9, 1  ;;  %s196_s18 = scalar_lea.sflag (!%p1058_p8), [#allocation3], %s1189_s9 }
  0x63   : > { %s199_s19 = scalar_lea.vmem (!%p1058_p8), [#allocation2], %s686_s10  ;;  %p1275_p7 = scmp.ne.s32.totalorder (!%p1058_p8), %s1269_s22, 0 }
  0x68   : > { %942 = dma.done.wait (%p1275_p7), %s196_s18, 32  }
  0x69   : > { %944 = vsyncadd (%p1275_p7), %s196_s18, 4294967264  ;;  %p1276_p12 = scmp.ne.s32.totalorder %s1267_s20, 0 }
  0x6b   : > { %946 = dma.done.wait (%p1276_p12), [#allocation6], 2176  }
  0x6c   : > { %948 = vsyncadd (%p1276_p12), [#allocation6], 4294965120  ;;  %v982_v0 = vmov 0   ;;  %v237_v1 = vld [vmem:[#allocation5] sm:$0xff]  ;;  %v238_v3 = vld [vmem:[#allocation5 + $0x8] sm:$0xff]  ;;  %vm333_vm0 = vcmask 261120   ;;  %v503_v39 = vlaneseq }
  0x6d   : > { %369 = vmatprep.mubr.bf16.mxu0 %v982_v0  ;;  %410 = vmatprep.mubr.bf16.mxu1 %v982_v0  ;;  %v241_v2 = vld [vmem:[#allocation5 + $0x20] sm:$0xff]  ;;  %v242_v5 = vld [vmem:[#allocation5 + $0x28] sm:$0xff]  ;;  %v231_v14 = vld [vmem:[%s199_s19] sm:$0x3]  ;;  %s689_s20 = sshll.u32 %s1189_s9, 6  ;;  %s716_s24 = sshll.u32 %s967_s15, 10 }
  0x6e   : > { %v692_v4 = vcombine.high %v237_v1, %v241_v2  ;;  %v691_v6 = vcombine.low %v237_v1, %v241_v2  ;;  %v245_v7 = vld [vmem:[#allocation5 + $0x40] sm:$0xff]  ;;  %v694_v9 = vcombine.high %v238_v3, %v242_v5  ;;  %v693_v10 = vcombine.low %v238_v3, %v242_v5  ;;  %v246_v12 = vld [vmem:[#allocation5 + $0x48] sm:$0xff]  ;;  %v239_v17 = vld [vmem:[#allocation5 + $0x10] sm:$0xff]  ;;  %s229_s22 = scalar_lea.vmem [#allocation8], %s689_s20  ;;  %s1210_s26 = scalar_lea.hbm %s1262_s3, %s716_s24 }
  0x6f   : > { %v249_v8 = vld [vmem:[#allocation5 + $0x60] sm:$0xff]  ;;  %v250_v13 = vld [vmem:[#allocation5 + $0x68] sm:$0xff]  ;;  %v232_v16 = vunpack.c.0.s8 %v231_v14  ;;  %v243_v18 = vld [vmem:[#allocation5 + $0x30] sm:$0xff]  ;;  %v504_v40 = vshrl.u32 %v503_v39, 7  ;;  %s576_s6 = sshll.u32 %s229_s22, 4  ;;  %s560_s15 = scalar_lea.sflag [#allocation4], %s1189_s9  ;;  %s1212_s6 = int_to_ptr.vmem [resolvable:$true] %s576_s6 }
  0x70   : > { %v700_v11 = vcombine.high %v245_v7, %v249_v8  ;;  %337 = vmatprep.subr.bf16.mxu0 %v692_v4  ;;  %v702_v15 = vcombine.high %v246_v12, %v250_v13  ;;  %v240_v19 = vld [vmem:[#allocation5 + $0x18] sm:$0xff]  ;;  %378 = vmatprep.subr.bf16.mxu1 %v694_v9  ;;  %v699_v20 = vcombine.low %v245_v7, %v249_v8  ;;  %v247_v27 = vld [vmem:[#allocation5 + $0x50] sm:$0xff]  ;;  %v501_v43 = vld [vmem:[#allocation7] sm:$0xff]  ;;  %s889_s29 = scalar_lea.vmem %s1212_s6, 1024  ;;  %p1277_p2 = scmp.ne.s32.totalorder %s1273_s27, 0 }
  0x71   : > { %338 = vmatpush1.bf16.msra.mxu0 %v691_v6  ;;  %v244_v21 = vld [vmem:[#allocation5 + $0x38] sm:$0xff]  ;;  %379 = vmatpush1.bf16.msra.mxu1 %v693_v10  ;;  %v701_v22 = vcombine.low %v246_v12, %v250_v13  ;;  %v233_v23 = vcvt.s32.f32 %v232_v16  ;;  %v696_v24 = vcombine.high %v239_v17, %v243_v18  ;;  %v251_v28 = vld [vmem:[#allocation5 + $0x70] sm:$0xff]  ;;  %v695_v32 = vcombine.low %v239_v17, %v243_v18  ;;  %p890_p8 = scmp.ne.s32.totalorder %s1212_s6, %s889_s29  ;;  %s983_s28 = smov [#allocation8]  }
  0x72   : > { %339 = vmatprep.subr.bf16.mxu0 %v700_v11  ;;  %380 = vmatprep.subr.bf16.mxu1 %v702_v15  ;;  %v698_v25 = vcombine.high %v240_v19, %v244_v21  ;;  %v248_v29 = vld [vmem:[#allocation5 + $0x58] sm:$0xff]  ;;  %v697_v33 = vcombine.low %v240_v19, %v244_v21  ;;  %v704_v35 = vcombine.high %v247_v27, %v251_v28  ;;  %v505_v41 = vsub.s32 0, %v504_v40  ;;  %s893_s25 = sshll.u32 %s983_s28, 4  ;;  %s894_s25 = int_to_ptr.vmem [resolvable:$false] %s893_s25 }
  0x73   : > { %v234_v26 = vmul.f32 2.0, %v233_v23  ;;  %v252_v30 = vld [vmem:[#allocation5 + $0x78] sm:$0xff]  ;;  %v703_v37 = vcombine.low %v247_v27, %v251_v28  ;;  %v513_v42 = vsub.s32 2, %v504_v40  ;;  %v509_v44 = vsub.s32 1, %v504_v40  ;;  %p891_p1 = pnand %p890_p8, %p1277_p2  ;;  %s895_s4 = scalar_lea.vmem %s894_s25, 2048 }
  0x74   : > { %v706_v36 = vcombine.high %v248_v29, %v252_v30  ;;  %v705_v38 = vcombine.low %v248_v29, %v252_v30  ;;  %v517_v45 = vsub.s32 3, %v504_v40  ;;  %v506_v46 = vrot.slane %v501_v43, %v505_v41  ;;  %p896_p3 = scmp.lt.s32.totalorder %s1212_s6, %s894_s25  ;;  %p897_p5 = scmp.lt.s32.totalorder %s895_s4, %s889_s29 }
  0x75   : > { %340 = vmatpush1.bf16.msra.mxu0 %v699_v20  ;;  %381 = vmatpush1.bf16.msra.mxu1 %v701_v22  ;;  %v690_v31 = vadd.f32 -1.0, %v234_v26  ;;  %v514_v47 = vrot.slane %v501_v43, %v513_v42  ;;  %v510_v48 = vrot.slane %v501_v43, %v509_v44  ;;  %v521_v56 = vsub.s32 4, %v504_v40  ;;  %p892_p10 = pneg %p891_p1 }
  0x76   : > { %419 = vmatprep.subr.bf16.mxu0 %v696_v24  ;;  %460 = vmatprep.subr.bf16.mxu1 %v698_v25  ;;  %v518_v49 = vrot.slane %v501_v43, %v517_v45  ;;  %v529_v57 = vsub.s32 6, %v504_v40  ;;  %v525_v62 = vsub.s32 5, %v504_v40  ;;  %v533_v63 = vsub.s32 7, %v504_v40  ;;  %p898_p9 = por %p897_p5, %p896_p3 }
  0x77   : > { %v236_v34 = vpack.c.bf16 %v690_v31, %v690_v31  ;;  %v522_v2 = vrot.slane %v501_v43, %v521_v56 }
  0x78   : > { %v530_v3 = vrot.slane %v501_v43, %v529_v57  ;;  %v526_v4 = vrot.slane %v501_v43, %v525_v62  ;;  %v534_v5 = vrot.slane %v501_v43, %v533_v63  ;;  %p899_p11 = pnand %p898_p9, %p892_p10 }
  0x79   : > { %707 = vmatmul.mubr.msk.bf16.vlgmr.msra.gmra.mrb[0].mxu0 %vm333_vm0, %v236_v34  ;;  %708 = vmatmul.mubr.msk.bf16.vlgmr.msra.gmra.mrb[0].mxu1 %vm333_vm0, %v236_v34 }
  0x7a   : > { %420 = vmatpush1.bf16.msra.mxu0 %v695_v32  ;;  %461 = vmatpush1.bf16.msra.mxu1 %v697_v33 }
  0x7b   : > { %421 = vmatprep.subr.bf16.mxu0 %v704_v35  ;;  %462 = vmatprep.subr.bf16.mxu1 %v706_v36 }
  0x7c   : > { %451 = vmatprep.mubr.bf16.mxu0 %v982_v0  ;;  %492 = vmatprep.mubr.bf16.mxu1 %v982_v0 }
  0x7e   : > { %422 = vmatpush1.bf16.msra.mxu0 %v703_v37  ;;  %463 = vmatpush1.bf16.msra.mxu1 %v705_v38 }
  0x81   : > { %709 = vmatmul.mubr.msk.bf16.vlgmr.msra.gmra.mrb[4].mxu0 %vm333_vm0, %v236_v34  ;;  %710 = vmatmul.mubr.msk.bf16.vlgmr.msra.gmra.mrb[4].mxu1 %vm333_vm0, %v236_v34 }
 0x14c   : > { %v371_v50 = vpop.f32.mrb[0].mxu0  ;;  %v412_v51 = vpop.f32.mrb[0].mxu1 }
 0x14d   : > { %v543_v52 = vmul.f32 %v506_v46, %v371_v50  ;;  %v545_v53 = vmul.f32 %v514_v47, %v412_v51  ;;  %v373_v54 = vpop.f32.mrb[1].mxu0  ;;  %v414_v55 = vpop.f32.mrb[1].mxu1 }
 0x14e   : > { %v544_v58 = vmul.f32 %v510_v48, %v373_v54  ;;  %v546_v59 = vmul.f32 %v518_v49, %v414_v55  ;;  %v375_v60 = vpop.f32.mrb[2].mxu0  ;;  %v416_v61 = vpop.f32.mrb[2].mxu1 }
 0x14f   : > { %551 = vst [vmem:[%s229_s22] sm:$0xff] %v543_v52  ;;  %553 = vst [vmem:[%s229_s22 + $0x10] sm:$0xff] %v545_v53  ;;  %v376_v0 = vpop.f32.mrb[3].mxu0  ;;  %v417_v1 = vpop.f32.mrb[3].mxu1 }
 0x150   : > { %552 = vst [vmem:[%s229_s22 + $0x8] sm:$0xff] %v544_v58  ;;  %554 = vst [vmem:[%s229_s22 + $0x18] sm:$0xff] %v546_v59 }
 0x154   : > { %v453_v6 = vpop.f32.mrb[4].mxu0  ;;  %v494_v7 = vpop.f32.mrb[4].mxu1 }
 0x155   : > { %v547_v8 = vmul.f32 %v522_v2, %v453_v6  ;;  %v549_v9 = vmul.f32 %v530_v3, %v494_v7  ;;  %v455_v10 = vpop.f32.mrb[5].mxu0  ;;  %v496_v11 = vpop.f32.mrb[5].mxu1 }
 0x156   : > { %v548_v12 = vmul.f32 %v526_v4, %v455_v10  ;;  %v550_v13 = vmul.f32 %v534_v5, %v496_v11  ;;  %v457_v14 = vpop.f32.mrb[6].mxu0  ;;  %v498_v15 = vpop.f32.mrb[6].mxu1 }
 0x157   : > { %555 = vst [vmem:[%s229_s22 + $0x20] sm:$0xff] %v547_v8  ;;  %557 = vst [vmem:[%s229_s22 + $0x30] sm:$0xff] %v549_v9  ;;  %v458_v16 = vpop.f32.mrb[7].mxu0  ;;  %v499_v17 = vpop.f32.mrb[7].mxu1 }
 0x158   : > { %556 = vst [vmem:[%s229_s22 + $0x28] sm:$0xff] %v548_v12  ;;  %558 = vst [vmem:[%s229_s22 + $0x38] sm:$0xff] %v550_v13 }
 0x159   : > { %902 = shalt.err (!%p899_p11)
}
 0x15a   : > { %s903_s5 = scalar_lea.hbm %s1210_s26, 1024  ;;  %s907_s10 = scalar_lea.hbm %s1262_s3, 2048 }
 0x15b   : > { %p904_p0 = scmp.ne.s32.totalorder %s1210_s26, %s903_s5  ;;  %p908_p6 = scmp.lt.u32.totalorder %s1210_s26, %s1262_s3 }
 0x15c   : > { %p909_p7 = scmp.lt.u32.totalorder %s907_s10, %s903_s5  ;;  %p911_p8 = scmp.lt.u32.totalorder %s903_s5, %s1210_s26 }
 0x15d   : > { %p905_p4 = pnand %p904_p0, %p1277_p2 }
 0x15e   : > { %p910_p12 = por %p909_p7, %p908_p6 }
 0x15f   : > { %p906_p13 = pneg %p905_p4 }
 0x160   : > { %p912_p1 = por %p911_p8, %p910_p12 }
 0x162   : > { %p913_p10 = pnand %p912_p1, %p906_p13 }
 0x164   : > { %916 = shalt.err (!%p913_p10)
}
 0x165   : > { %727 = dma.vmem_to_hbm [thread:$0]  (%p1277_p2), %s1212_s6, 1024, %s1210_s26, %s560_s15  }
 0x166 PF: > { %s588_s20 = sand.u32 1, %s955_s12   ;;  %p1278_p3 = scmp.ne.s32.totalorder %s1270_s23, 0 }
 0x167   : > { %p1279_p5 = scmp.ge.s32.totalorder %s975_s17, 2  ;;  %s589_s22 = scalar_lea.sflag [#allocation4], %s588_s20 }
 0x169   : > { %p741_p9 = pnand %p1279_p5, %p1278_p3 }
 0x16b   : > { %950 = dma.done.wait (!%p741_p9), %s589_s22, 1024  }
 0x16c   : > { %952 = vsyncadd (!%p741_p9), %s589_s22, 4294966272  ;;  %s20_s17 = sadd.s32 1, %s975_s17   ;;  %s1280_s12 = smov %s959_s13 }
 0x16d   : > { %p17_p11 = scmp.ge.s32.totalorder %s20_s17, 4   ;;  %s1281_s13 = smov %s963_s14 }
 0x16e   : > { %s1282_s14 = smov %s1146_s30  ;;  %s1283_s15 = smov %s971_s16 }
 0x16f   : > { %s1284_s16 = smov %s1286_s11  ;;  %19 = sbr.rel (!%p17_p11) target bundleno = 7 (0x7), region = 85 }
 0x176   :  { %594 = vsyncpa [#allocation3], 1 }
 0x177   :  { %596 = vsyncpa [#allocation3 + $0x1], 1 }
 0x178   :  { %597 = vsyncpa [#allocation6], 1 }
 0x179   :  { %598 = vsyncpa [#allocation4], 1 }
 0x17a   :  { %600 = vsyncpa [#allocation4 + $0x1], 1 }

</bundles_post_ra>
